<compile_context>
chip_gen: v5e
topology: v5e:2x2
jax: 0.10.0
libtpu: 0.0.40
codegen_flags: <defaults>
</compile_context>

<pallas_src>
import jax
import jax.numpy as jnp
from jax.experimental import pallas as pl
from jax.experimental.pallas import tpu as pltpu

K_IN = 784
K_PAD = 896            # 7 * 128: unmasked lane tiles for the fc1 contraction
H1, H2, H3 = 128, 64, 32
TB_MAX = 512           # batch tile; sized for the smallest scoped-VMEM target (v5e)


def _leaky_relu(x, slope=0.2):
    return jnp.where(x > 0, x, slope * x)


def _round_up(n, m):
    return ((n + m - 1) // m) * m


def discriminator_kernel(x_ref,
                         w1_ref, b1_ref,
                         w2_ref, b2_ref,
                         w3_ref, b3_ref,
                         w4_ref, b4_ref,
                         o_ref):
    # fc1 (carries ~97% of the FLOPs): (TB, 896) @ (896, 128) on the MXU,
    # f32 accumulation regardless of the streaming dtype of x / w1.
    h = jnp.dot(x_ref[...], w1_ref[...], preferred_element_type=jnp.float32)
    h = _leaky_relu(h + b1_ref[...])
    # dropout(p=0.3) -> identity (eval mode).
    # fc2: (TB, 128) @ (128, 64)
    h = jnp.dot(h, w2_ref[...], preferred_element_type=jnp.float32)
    h = _leaky_relu(h + b2_ref[...])
    # fc3: (TB, 64) @ (64, 32)
    h = jnp.dot(h, w3_ref[...], preferred_element_type=jnp.float32)
    h = _leaky_relu(h + b3_ref[...])
    # fc4: out_features=1 -> skip the 1-column MXU matmul; VPU multiply +
    # lane reduce (w4 passed as a (1, 32) row, b4 as (1, 1)).
    logit = jnp.sum(h * w4_ref[...], axis=-1, keepdims=True) + b4_ref[...]
    o_ref[...] = _leaky_relu(logit).astype(o_ref.dtype)


def discriminator_forward(x, params, *, stream_dtype=jnp.float32):
    """x: any shape flattening to (-1, 784). Returns (B, 1) float32.

    stream_dtype: dtype for the HBM-streamed x tiles and w1 (the bandwidth
    dominant operands). jnp.bfloat16 halves HBM traffic; accumulation is f32.
    """
    (w1, b1), (w2, b2), (w3, b3), (w4, b4) = params

    x2d = x.reshape(-1, K_IN).astype(jnp.float32)   # == torch x.view(-1, 784)
    B = x2d.shape[0]

    # Batch tile: multiple of 16 (covers f32 and bf16 sublane packing).
    TB = min(TB_MAX, _round_up(B, 16))
    B_pad = _round_up(B, TB)

    # Zero-pad: batch to a whole number of tiles, contraction dim 784 -> 896.
    # Zero padding contributes nothing to the dot product -> math unchanged.
    x_p = jnp.pad(x2d, ((0, B_pad - B), (0, K_PAD - K_IN))).astype(stream_dtype)
    w1_p = jnp.pad(w1, ((0, K_PAD - K_IN), (0, 0))).astype(stream_dtype)

    args = (x_p,
            w1_p, b1.reshape(1, H1).astype(jnp.float32),
            w2.astype(jnp.float32), b2.reshape(1, H2).astype(jnp.float32),
            w3.astype(jnp.float32), b3.reshape(1, H3).astype(jnp.float32),
            w4.reshape(1, H3).astype(jnp.float32),     # (32,1) -> (1,32) row
            b4.reshape(1, 1).astype(jnp.float32))

    grid = (B_pad // TB,)
    in_specs = [
        pl.BlockSpec((TB, K_PAD), lambda i: (i, 0)),   # x: batch-tiled stream
        pl.BlockSpec((K_PAD, H1), lambda i: (0, 0)),   # w1  (VMEM-resident)
        pl.BlockSpec((1, H1), lambda i: (0, 0)),       # b1
        pl.BlockSpec((H1, H2), lambda i: (0, 0)),      # w2
        pl.BlockSpec((1, H2), lambda i: (0, 0)),       # b2
        pl.BlockSpec((H2, H3), lambda i: (0, 0)),      # w3
        pl.BlockSpec((1, H3), lambda i: (0, 0)),       # b3
        pl.BlockSpec((1, H3), lambda i: (0, 0)),       # w4 (as row)
        pl.BlockSpec((1, 1), lambda i: (0, 0)),        # b4
    ]
    out_specs = pl.BlockSpec((TB, 1), lambda i: (i, 0))

    out = pl.pallas_call(
        discriminator_kernel,
        out_shape=jax.ShapeDtypeStruct((B_pad, 1), jnp.float32),
        grid=grid,
        in_specs=in_specs,
        out_specs=out_specs,
        compiler_params=pltpu.CompilerParams(
            dimension_semantics=("parallel",)),        # megacore-shard batch grid
    )(*args)
    return out[:B]


def init_params(key):
    """Deterministic init matching nn.Linear shapes.

    PyTorch Linear stores weight as (out, in); we store the transpose (in, out)
    so the kernel computes x @ W directly.
    """
    dims = [(784, 128), (128, 64), (64, 32), (32, 1)]
    params = []
    for (fan_in, fan_out) in dims:
        key, kw, kb = jax.random.split(key, 3)
        bound = 1.0 / (fan_in ** 0.5)
        w = jax.random.uniform(kw, (fan_in, fan_out), jnp.float32, -bound, bound)
        b = jax.random.uniform(kb, (fan_out,), jnp.float32, -bound, bound)
        params.append((w, b))
    return params


def reference_forward(x, params):
    h = x.reshape(-1, 784).astype(jnp.float32)
    for (w, b) in params:
        h = h @ w + b
        h = jnp.where(h > 0, h, 0.2 * h)
    return h


if __name__ == "__main__":
    key = jax.random.PRNGKey(0)
    kp, kx = jax.random.split(key)

    params = init_params(kp)
    # small MNIST-like batch: (2, 1, 28, 28) -> view(-1, 784)
    x = jax.random.normal(kx, (2, 1, 28, 28), jnp.float32)
    ref = reference_forward(x, params)

    # f32 path: exact module semantics.
    out = jax.block_until_ready(discriminator_forward(x, params))
    assert out.shape == (2, 1), out.shape
    assert jnp.allclose(out, ref, atol=1e-4, rtol=1e-4), "f32 mismatch vs reference"

    # bf16-streamed path: halves HBM traffic on x / w1, f32 MXU accumulation.
    out_bf16 = jax.block_until_ready(
        discriminator_forward(x, params, stream_dtype=jnp.bfloat16))
    assert out_bf16.shape == (2, 1), out_bf16.shape
    assert jnp.allclose(out_bf16, ref, atol=5e-2, rtol=5e-2), "bf16 mismatch vs reference"

    print("KERNEL_OK")
</pallas_src>

<mosaic_0001>
module attributes {stable_mosaic.version = 11 : i64} {
  func.func @discriminator_kernel(%arg0: i32, %arg1: memref<16x896xf32, #tpu.memory_space<vmem>>, %arg2: memref<896x128xf32, #tpu.memory_space<vmem>>, %arg3: memref<1x128xf32, #tpu.memory_space<vmem>>, %arg4: memref<128x64xf32, #tpu.memory_space<vmem>>, %arg5: memref<1x64xf32, #tpu.memory_space<vmem>>, %arg6: memref<64x32xf32, #tpu.memory_space<vmem>>, %arg7: memref<1x32xf32, #tpu.memory_space<vmem>>, %arg8: memref<1x32xf32, #tpu.memory_space<vmem>>, %arg9: memref<1x1xf32, #tpu.memory_space<vmem>>, %arg10: memref<16x1xf32, #tpu.memory_space<vmem>>) attributes {dimension_semantics = [#tpu.dimension_semantics<parallel>], iteration_bounds = array<i64: 1>, scalar_prefetch = 0 : i64, scratch_operands = 0 : i64, tpu.core_type = #tpu.core_type<tc>, window_params = [{transform_indices = @transform_0, window_bounds = array<i64: 16, 896>}, {pipeline_mode = #tpu.pipeline_mode<synchronous>, transform_indices = @transform_1, window_bounds = array<i64: 896, 128>}, {pipeline_mode = #tpu.pipeline_mode<synchronous>, transform_indices = @transform_2, window_bounds = array<i64: 1, 128>}, {pipeline_mode = #tpu.pipeline_mode<synchronous>, transform_indices = @transform_3, window_bounds = array<i64: 128, 64>}, {pipeline_mode = #tpu.pipeline_mode<synchronous>, transform_indices = @transform_4, window_bounds = array<i64: 1, 64>}, {pipeline_mode = #tpu.pipeline_mode<synchronous>, transform_indices = @transform_5, window_bounds = array<i64: 64, 32>}, {pipeline_mode = #tpu.pipeline_mode<synchronous>, transform_indices = @transform_6, window_bounds = array<i64: 1, 32>}, {pipeline_mode = #tpu.pipeline_mode<synchronous>, transform_indices = @transform_7, window_bounds = array<i64: 1, 32>}, {pipeline_mode = #tpu.pipeline_mode<synchronous>, transform_indices = @transform_8, window_bounds = array<i64: 1, 1>}, {transform_indices = @transform_9, window_bounds = array<i64: 16, 1>}]} {
    %c0 = arith.constant 0 : index
    %c0_0 = arith.constant 0 : index
    %0 = vector.load %arg1[%c0, %c0_0] : memref<16x896xf32, #tpu.memory_space<vmem>>, vector<16x896xf32>
    %c0_1 = arith.constant 0 : index
    %c0_2 = arith.constant 0 : index
    %1 = vector.load %arg2[%c0_1, %c0_2] : memref<896x128xf32, #tpu.memory_space<vmem>>, vector<896x128xf32>
    %cst = arith.constant dense<0.000000e+00> : vector<16x128xf32>
    %2 = tpu.matmul %0, %1, %cst {dimension_numbers = #tpu.dot_dimension_numbers<[1], [0], [0], [1], [0, 0, 1, 1], [], []>} : vector<16x896xf32>, vector<896x128xf32>, vector<16x128xf32> -> vector<16x128xf32>
    %c0_3 = arith.constant 0 : index
    %c0_4 = arith.constant 0 : index
    %3 = vector.load %arg3[%c0_3, %c0_4] : memref<1x128xf32, #tpu.memory_space<vmem>>, vector<1x128xf32>
    %4 = vector.broadcast %3 : vector<1x128xf32> to vector<16x128xf32>
    %5 = arith.addf %2, %4 : vector<16x128xf32>
    %cst_5 = arith.constant 0.000000e+00 : f32
    %6 = vector.broadcast %cst_5 : f32 to vector<16x128xf32>
    %7 = arith.cmpf ogt, %5, %6 : vector<16x128xf32>
    %cst_6 = arith.constant 2.000000e-01 : f32
    %8 = vector.broadcast %cst_6 : f32 to vector<16x128xf32>
    %9 = arith.mulf %8, %5 : vector<16x128xf32>
    %10 = arith.select %7, %5, %9 : vector<16x128xi1>, vector<16x128xf32>
    %c0_7 = arith.constant 0 : index
    %c0_8 = arith.constant 0 : index
    %11 = vector.load %arg4[%c0_7, %c0_8] : memref<128x64xf32, #tpu.memory_space<vmem>>, vector<128x64xf32>
    %cst_9 = arith.constant dense<0.000000e+00> : vector<16x64xf32>
    %12 = tpu.matmul %10, %11, %cst_9 {dimension_numbers = #tpu.dot_dimension_numbers<[1], [0], [0], [1], [0, 0, 1, 1], [], []>} : vector<16x128xf32>, vector<128x64xf32>, vector<16x64xf32> -> vector<16x64xf32>
    %c0_10 = arith.constant 0 : index
    %c0_11 = arith.constant 0 : index
    %13 = vector.load %arg5[%c0_10, %c0_11] : memref<1x64xf32, #tpu.memory_space<vmem>>, vector<1x64xf32>
    %14 = vector.broadcast %13 : vector<1x64xf32> to vector<16x64xf32>
    %15 = arith.addf %12, %14 : vector<16x64xf32>
    %cst_12 = arith.constant 0.000000e+00 : f32
    %16 = vector.broadcast %cst_12 : f32 to vector<16x64xf32>
    %17 = arith.cmpf ogt, %15, %16 : vector<16x64xf32>
    %cst_13 = arith.constant 2.000000e-01 : f32
    %18 = vector.broadcast %cst_13 : f32 to vector<16x64xf32>
    %19 = arith.mulf %18, %15 : vector<16x64xf32>
    %20 = arith.select %17, %15, %19 : vector<16x64xi1>, vector<16x64xf32>
    %c0_14 = arith.constant 0 : index
    %c0_15 = arith.constant 0 : index
    %21 = vector.load %arg6[%c0_14, %c0_15] : memref<64x32xf32, #tpu.memory_space<vmem>>, vector<64x32xf32>
    %cst_16 = arith.constant dense<0.000000e+00> : vector<16x32xf32>
    %22 = tpu.matmul %20, %21, %cst_16 {dimension_numbers = #tpu.dot_dimension_numbers<[1], [0], [0], [1], [0, 0, 1, 1], [], []>} : vector<16x64xf32>, vector<64x32xf32>, vector<16x32xf32> -> vector<16x32xf32>
    %c0_17 = arith.constant 0 : index
    %c0_18 = arith.constant 0 : index
    %23 = vector.load %arg7[%c0_17, %c0_18] : memref<1x32xf32, #tpu.memory_space<vmem>>, vector<1x32xf32>
    %24 = vector.broadcast %23 : vector<1x32xf32> to vector<16x32xf32>
    %25 = arith.addf %22, %24 : vector<16x32xf32>
    %cst_19 = arith.constant 0.000000e+00 : f32
    %26 = vector.broadcast %cst_19 : f32 to vector<16x32xf32>
    %27 = arith.cmpf ogt, %25, %26 : vector<16x32xf32>
    %cst_20 = arith.constant 2.000000e-01 : f32
    %28 = vector.broadcast %cst_20 : f32 to vector<16x32xf32>
    %29 = arith.mulf %28, %25 : vector<16x32xf32>
    %30 = arith.select %27, %25, %29 : vector<16x32xi1>, vector<16x32xf32>
    %c0_21 = arith.constant 0 : index
    %c0_22 = arith.constant 0 : index
    %31 = vector.load %arg8[%c0_21, %c0_22] : memref<1x32xf32, #tpu.memory_space<vmem>>, vector<1x32xf32>
    %32 = vector.broadcast %31 : vector<1x32xf32> to vector<16x32xf32>
    %33 = arith.mulf %30, %32 : vector<16x32xf32>
    %cst_23 = arith.constant dense<0.000000e+00> : vector<16xf32>
    %34 = vector.multi_reduction <add>, %33, %cst_23 [1] : vector<16x32xf32> to vector<16xf32>
    %35 = vector.shape_cast %34 : vector<16xf32> to vector<16x1xf32>
    %c0_24 = arith.constant 0 : index
    %c0_25 = arith.constant 0 : index
    %36 = vector.load %arg9[%c0_24, %c0_25] : memref<1x1xf32, #tpu.memory_space<vmem>>, vector<1x1xf32>
    %37 = vector.broadcast %36 : vector<1x1xf32> to vector<16x1xf32>
    %38 = arith.addf %35, %37 : vector<16x1xf32>
    %cst_26 = arith.constant 0.000000e+00 : f32
    %39 = vector.broadcast %cst_26 : f32 to vector<16x1xf32>
    %40 = arith.cmpf ogt, %38, %39 : vector<16x1xf32>
    %cst_27 = arith.constant 2.000000e-01 : f32
    %41 = vector.broadcast %cst_27 : f32 to vector<16x1xf32>
    %42 = arith.mulf %41, %38 : vector<16x1xf32>
    %43 = arith.select %40, %38, %42 : vector<16x1xi1>, vector<16x1xf32>
    %c0_28 = arith.constant 0 : index
    %c0_29 = arith.constant 0 : index
    %44 = vector.load %arg10[%c0_28, %c0_29] : memref<16x1xf32, #tpu.memory_space<vmem>>, vector<16x1xf32>
    tpu.vector_store %arg10[%c0_28, %c0_29], %43 {strides = array<i32>} : memref<16x1xf32, #tpu.memory_space<vmem>>, vector<16x1xf32>,
    return
  }
  func.func @transform_0(%arg0: i32) -> (i32, i32) {
    %c0_i32 = arith.constant 0 : i32
    %c0_i32_0 = arith.constant 0 : i32
    return %arg0, %c0_i32 : i32, i32
  }
  func.func @transform_1(%arg0: i32) -> (i32, i32) {
    %c0_i32 = arith.constant 0 : i32
    %c0_i32_0 = arith.constant 0 : i32
    %c0_i32_1 = arith.constant 0 : i32
    return %c0_i32, %c0_i32_0 : i32, i32
  }
  func.func @transform_2(%arg0: i32) -> (i32, i32) {
    %c0_i32 = arith.constant 0 : i32
    %c0_i32_0 = arith.constant 0 : i32
    %c0_i32_1 = arith.constant 0 : i32
    return %c0_i32, %c0_i32_0 : i32, i32
  }
  func.func @transform_3(%arg0: i32) -> (i32, i32) {
    %c0_i32 = arith.constant 0 : i32
    %c0_i32_0 = arith.constant 0 : i32
    %c0_i32_1 = arith.constant 0 : i32
    return %c0_i32, %c0_i32_0 : i32, i32
  }
  func.func @transform_4(%arg0: i32) -> (i32, i32) {
    %c0_i32 = arith.constant 0 : i32
    %c0_i32_0 = arith.constant 0 : i32
    %c0_i32_1 = arith.constant 0 : i32
    return %c0_i32, %c0_i32_0 : i32, i32
  }
  func.func @transform_5(%arg0: i32) -> (i32, i32) {
    %c0_i32 = arith.constant 0 : i32
    %c0_i32_0 = arith.constant 0 : i32
    %c0_i32_1 = arith.constant 0 : i32
    return %c0_i32, %c0_i32_0 : i32, i32
  }
  func.func @transform_6(%arg0: i32) -> (i32, i32) {
    %c0_i32 = arith.constant 0 : i32
    %c0_i32_0 = arith.constant 0 : i32
    %c0_i32_1 = arith.constant 0 : i32
    return %c0_i32, %c0_i32_0 : i32, i32
  }
  func.func @transform_7(%arg0: i32) -> (i32, i32) {
    %c0_i32 = arith.constant 0 : i32
    %c0_i32_0 = arith.constant 0 : i32
    %c0_i32_1 = arith.constant 0 : i32
    return %c0_i32, %c0_i32_0 : i32, i32
  }
  func.func @transform_8(%arg0: i32) -> (i32, i32) {
    %c0_i32 = arith.constant 0 : i32
    %c0_i32_0 = arith.constant 0 : i32
    %c0_i32_1 = arith.constant 0 : i32
    return %c0_i32, %c0_i32_0 : i32, i32
  }
  func.func @transform_9(%arg0: i32) -> (i32, i32) {
    %c0_i32 = arith.constant 0 : i32
    %c0_i32_0 = arith.constant 0 : i32
    return %arg0, %c0_i32 : i32, i32
  }
}

</mosaic_0001>

<bundles_post_ra>
// kernel: tpu_custom_call.1
= control target key start
LH: loop header
LB: loop body
LE: loop exit
PB: predicated region body
PF: predicated region fallthrough
CT: control target
= control target key end

     0   :  { %s712_s0 = inlined_call_operand.vmem [shape: f32[16,896], index: 0, kind: input, shape index: {}]   ;;  %s713_s1 = inlined_call_operand.hbm [shape: f32[896,128], index: 1, kind: input, shape index: {}]   ;;  %s714_s2 = inlined_call_operand.vmem [shape: f32[1,128], index: 2, kind: input, shape index: {}]   ;;  %s715_s3 = inlined_call_operand.vmem [shape: f32[128,64], index: 3, kind: input, shape index: {}]   ;;  %s716_s4 = inlined_call_operand.vmem [shape: f32[1,64], index: 4, kind: input, shape index: {}]   ;;  %s717_s5 = inlined_call_operand.vmem [shape: f32[64,32], index: 5, kind: input, shape index: {}]   ;;  %s718_s6 = inlined_call_operand.vmem [shape: f32[1,32], index: 6, kind: input, shape index: {}]   ;;  %s719_s7 = inlined_call_operand.vmem [shape: f32[1,32], index: 7, kind: input, shape index: {}]   ;;  %s720_s8 = inlined_call_operand.<no memory space> [shape: f32[1,1], index: 8, kind: input, shape index: {}]   ;;  %s721_s9 = inlined_call_operand.vmem [shape: f32[16,1], index: 9, kind: output, shape index: {}]  }
   0x1   :  { %v14_v0 = vstv %s720_s8 }
   0x2   :  { %15 = vst [vmem:[#allocation2] sm:$0x1] %v14_v0 }
   0x3   :  { %16 = vsyncpa [#allocation4], 0  ;;  %s23_s13 = sshll.u32 %s713_s1, 4  ;;  %s521_s14 = smov [#allocation3]   ;;  %s24_s13 = int_to_ptr.hbm [resolvable:$true] %s23_s13 }
   0x4   :  { %s25_s15 = sshll.u32 %s521_s14, 4  ;;  %s522_s16 = smov 128   ;;  %s26_s15 = int_to_ptr.vmem [resolvable:$true] %s25_s15 }
   0x5   :  { %s523_s17 = smov 8  }
   0x6   :  { %31 = dma.hbm_to_vmem [thread:$0]  %s24_s13, 14336, %s26_s15, [#allocation4], %s522_s16, %s522_s16, %s523_s17  }
   0x7   :  { %519 = dma.done.wait [#allocation4], 14336  }
   0x8   :  { %520 = vsyncadd [#allocation4], 4294952960  ;;  %v79_v1 = vld [vmem:[#allocation3 + $0x78] sm:$0xff]  ;;  %v78_v3 = vld [vmem:[#allocation3 + $0x70] sm:$0xff]  ;;  %vm408_vm3 = vcmask 523264   ;;  %vm450_vm6 = vcmask 261120  }
   0x9   :  { %v111_v2 = vld [vmem:[#allocation3 + $0x178] sm:$0xff]  ;;  %180 = vmatpush.msra.mxu0 %v79_v1  ;;  %v110_v5 = vld [vmem:[#allocation3 + $0x170] sm:$0xff]  ;;  %v77_v6 = vld [vmem:[#allocation3 + $0x68] sm:$0xff]  ;;  %vm469_vm8 = vcmask 7168  }
   0xa   :  { %226 = vmatpush.msra.mxu2 %v111_v2  ;;  %v95_v4 = vld [vmem:[#allocation3 + $0xf8] sm:$0xff]  ;;  %v94_v7 = vld [vmem:[#allocation3 + $0xf0] sm:$0xff]  ;;  %v109_v8 = vld [vmem:[#allocation3 + $0x168] sm:$0xff] }
   0xb   :  { %203 = vmatpush.msra.mxu1 %v95_v4  ;;  %181 = vmatpush.msra.mxu0 %v78_v3  ;;  %v93_v9 = vld [vmem:[#allocation3 + $0xe8] sm:$0xff]  ;;  %v76_v10 = vld [vmem:[#allocation3 + $0x60] sm:$0xff]  ;;  %v75_v13 = vld [vmem:[#allocation3 + $0x58] sm:$0xff] }
   0xc   :  { %227 = vmatpush.msra.mxu2 %v110_v5  ;;  %v108_v11 = vld [vmem:[#allocation3 + $0x160] sm:$0xff]  ;;  %v107_v14 = vld [vmem:[#allocation3 + $0x158] sm:$0xff]  ;;  %v74_v16 = vld [vmem:[#allocation3 + $0x50] sm:$0xff] }
   0xd   :  { %204 = vmatpush.msra.mxu1 %v94_v7  ;;  %182 = vmatpush.msra.mxu0 %v77_v6  ;;  %v92_v12 = vld [vmem:[#allocation3 + $0xe0] sm:$0xff]  ;;  %v91_v15 = vld [vmem:[#allocation3 + $0xd8] sm:$0xff]  ;;  %v106_v17 = vld [vmem:[#allocation3 + $0x150] sm:$0xff] }
   0xe   :  { %228 = vmatpush.msra.mxu2 %v109_v8  ;;  %v127_v18 = vld [vmem:[#allocation3 + $0x1f8] sm:$0xff]  ;;  %v90_v19 = vld [vmem:[#allocation3 + $0xd0] sm:$0xff]  ;;  %v73_v20 = vld [vmem:[#allocation3 + $0x48] sm:$0xff] }
   0xf   :  { %205 = vmatpush.msra.mxu1 %v93_v9  ;;  %183 = vmatpush.msra.mxu0 %v76_v10  ;;  %v105_v21 = vld [vmem:[#allocation3 + $0x148] sm:$0xff]  ;;  %v126_v22 = vld [vmem:[#allocation3 + $0x1f0] sm:$0xff]  ;;  %v72_v25 = vld [vmem:[#allocation3 + $0x40] sm:$0xff] }
  0x10   :  { %229 = vmatpush.msra.mxu2 %v108_v11  ;;  %249 = vmatpush.msra.mxu3 %v127_v18  ;;  %v89_v23 = vld [vmem:[#allocation3 + $0xc8] sm:$0xff]  ;;  %v104_v26 = vld [vmem:[#allocation3 + $0x140] sm:$0xff]  ;;  %v71_v29 = vld [vmem:[#allocation3 + $0x38] sm:$0xff] }
  0x11   :  { %206 = vmatpush.msra.mxu1 %v92_v12  ;;  %184 = vmatpush.msra.mxu0 %v75_v13  ;;  %v125_v24 = vld [vmem:[#allocation3 + $0x1e8] sm:$0xff]  ;;  %v88_v27 = vld [vmem:[#allocation3 + $0xc0] sm:$0xff]  ;;  %v103_v30 = vld [vmem:[#allocation3 + $0x138] sm:$0xff] }
  0x12   :  { %230 = vmatpush.msra.mxu2 %v107_v14  ;;  %250 = vmatpush.msra.mxu3 %v126_v22  ;;  %v124_v28 = vld [vmem:[#allocation3 + $0x1e0] sm:$0xff]  ;;  %v87_v31 = vld [vmem:[#allocation3 + $0xb8] sm:$0xff]  ;;  %v70_v33 = vld [vmem:[#allocation3 + $0x30] sm:$0xff] }
  0x13   :  { %207 = vmatpush.msra.mxu1 %v91_v15  ;;  %185 = vmatpush.msra.mxu0 %v74_v16  ;;  %v123_v32 = vld [vmem:[#allocation3 + $0x1d8] sm:$0xff]  ;;  %v102_v34 = vld [vmem:[#allocation3 + $0x130] sm:$0xff]  ;;  %v69_v37 = vld [vmem:[#allocation3 + $0x28] sm:$0xff] }
  0x14   :  { %231 = vmatpush.msra.mxu2 %v106_v17  ;;  %251 = vmatpush.msra.mxu3 %v125_v24  ;;  %v86_v35 = vld [vmem:[#allocation3 + $0xb0] sm:$0xff]  ;;  %v101_v38 = vld [vmem:[#allocation3 + $0x128] sm:$0xff]  ;;  %v68_v41 = vld [vmem:[#allocation3 + $0x20] sm:$0xff] }
  0x15   :  { %208 = vmatpush.msra.mxu1 %v90_v19  ;;  %186 = vmatpush.msra.mxu0 %v73_v20  ;;  %v122_v36 = vld [vmem:[#allocation3 + $0x1d0] sm:$0xff]  ;;  %v85_v39 = vld [vmem:[#allocation3 + $0xa8] sm:$0xff]  ;;  %v100_v42 = vld [vmem:[#allocation3 + $0x120] sm:$0xff] }
  0x16   :  { %232 = vmatpush.msra.mxu2 %v105_v21  ;;  %252 = vmatpush.msra.mxu3 %v124_v28  ;;  %v121_v40 = vld [vmem:[#allocation3 + $0x1c8] sm:$0xff]  ;;  %v84_v43 = vld [vmem:[#allocation3 + $0xa0] sm:$0xff]  ;;  %v67_v45 = vld [vmem:[#allocation3 + $0x18] sm:$0xff] }
  0x17   :  { %209 = vmatpush.msra.mxu1 %v89_v23  ;;  %187 = vmatpush.msra.mxu0 %v72_v25  ;;  %v120_v44 = vld [vmem:[#allocation3 + $0x1c0] sm:$0xff]  ;;  %v99_v46 = vld [vmem:[#allocation3 + $0x118] sm:$0xff]  ;;  %v66_v49 = vld [vmem:[#allocation3 + $0x10] sm:$0xff] }
  0x18   :  { %233 = vmatpush.msra.mxu2 %v104_v26  ;;  %253 = vmatpush.msra.mxu3 %v123_v32  ;;  %v83_v47 = vld [vmem:[#allocation3 + $0x98] sm:$0xff]  ;;  %v98_v50 = vld [vmem:[#allocation3 + $0x110] sm:$0xff]  ;;  %v65_v53 = vld [vmem:[#allocation3 + $0x8] sm:$0xff] }
  0x19   :  { %210 = vmatpush.msra.mxu1 %v88_v27  ;;  %188 = vmatpush.msra.mxu0 %v71_v29  ;;  %v119_v48 = vld [vmem:[#allocation3 + $0x1b8] sm:$0xff]  ;;  %v82_v51 = vld [vmem:[#allocation3 + $0x90] sm:$0xff]  ;;  %v97_v54 = vld [vmem:[#allocation3 + $0x108] sm:$0xff] }
  0x1a   :  { %234 = vmatpush.msra.mxu2 %v103_v30  ;;  %254 = vmatpush.msra.mxu3 %v122_v36  ;;  %v118_v52 = vld [vmem:[#allocation3 + $0x1b0] sm:$0xff]  ;;  %v81_v55 = vld [vmem:[#allocation3 + $0x88] sm:$0xff]  ;;  %v64_v57 = vld [vmem:[#allocation3] sm:$0xff] }
  0x1b   :  { %211 = vmatpush.msra.mxu1 %v87_v31  ;;  %189 = vmatpush.msra.mxu0 %v70_v33  ;;  %v117_v56 = vld [vmem:[#allocation3 + $0x1a8] sm:$0xff]  ;;  %v96_v58 = vld [vmem:[#allocation3 + $0x100] sm:$0xff]  ;;  %v143_v59 = vld [vmem:[#allocation3 + $0x278] sm:$0xff] }
  0x1c   :  { %235 = vmatpush.msra.mxu2 %v102_v34  ;;  %255 = vmatpush.msra.mxu3 %v121_v40  ;;  %v175_v60 = vld [vmem:[#allocation3 + $0x378] sm:$0xff]  ;;  %v80_v61 = vld [vmem:[#allocation3 + $0x80] sm:$0xff]  ;;  %v142_v63 = vld [vmem:[#allocation3 + $0x270] sm:$0xff] }
  0x1d   :  { %212 = vmatpush.msra.mxu1 %v86_v35  ;;  %190 = vmatpush.msra.mxu0 %v69_v37  ;;  %v116_v62 = vld [vmem:[#allocation3 + $0x1a0] sm:$0xff]  ;;  %v159_v0 = vld [vmem:[#allocation3 + $0x2f8] sm:$0xff]  ;;  %v174_v1 = vld [vmem:[#allocation3 + $0x370] sm:$0xff] }
  0x1e   :  { %236 = vmatpush.msra.mxu2 %v101_v38  ;;  %256 = vmatpush.msra.mxu3 %v120_v44  ;;  %v115_v2 = vld [vmem:[#allocation3 + $0x198] sm:$0xff]  ;;  %v141_v3 = vld [vmem:[#allocation3 + $0x268] sm:$0xff]  ;;  %v158_v4 = vld [vmem:[#allocation3 + $0x2f0] sm:$0xff] }
  0x1f   :  { %213 = vmatpush.msra.mxu1 %v85_v39  ;;  %191 = vmatpush.msra.mxu0 %v68_v41  ;;  %v173_v5 = vld [vmem:[#allocation3 + $0x368] sm:$0xff]  ;;  %v114_v6 = vld [vmem:[#allocation3 + $0x190] sm:$0xff]  ;;  %v140_v7 = vld [vmem:[#allocation3 + $0x260] sm:$0xff] }
  0x20   :  { %237 = vmatpush.msra.mxu2 %v100_v42  ;;  %257 = vmatpush.msra.mxu3 %v119_v48  ;;  %v157_v8 = vld [vmem:[#allocation3 + $0x2e8] sm:$0xff]  ;;  %v172_v9 = vld [vmem:[#allocation3 + $0x360] sm:$0xff]  ;;  %v139_v11 = vld [vmem:[#allocation3 + $0x258] sm:$0xff] }
  0x21   :  { %214 = vmatpush.msra.mxu1 %v84_v43  ;;  %192 = vmatpush.msra.mxu0 %v67_v45  ;;  %v113_v10 = vld [vmem:[#allocation3 + $0x188] sm:$0xff]  ;;  %v156_v12 = vld [vmem:[#allocation3 + $0x2e0] sm:$0xff]  ;;  %v171_v13 = vld [vmem:[#allocation3 + $0x358] sm:$0xff] }
  0x22   :  { %238 = vmatpush.msra.mxu2 %v99_v46  ;;  %258 = vmatpush.msra.mxu3 %v118_v52  ;;  %v50_v14 = vld [vmem:[%s712_s0] sm:$0xff]  ;;  %v138_v15 = vld [vmem:[#allocation3 + $0x250] sm:$0xff]  ;;  %v137_v18 = vld [vmem:[#allocation3 + $0x248] sm:$0xff] }
  0x23   :  { %215 = vmatpush.msra.mxu1 %v83_v47  ;;  %193 = vmatpush.msra.mxu0 %v66_v49  ;;  %v155_v16 = vld [vmem:[#allocation3 + $0x2d8] sm:$0xff]  ;;  %v170_v17 = vld [vmem:[#allocation3 + $0x350] sm:$0xff]  ;;  %v112_v19 = vld [vmem:[#allocation3 + $0x180] sm:$0xff] }
  0x24   :  { %239 = vmatpush.msra.mxu2 %v98_v50  ;;  %259 = vmatpush.msra.mxu3 %v117_v56  ;;  %v154_v20 = vld [vmem:[#allocation3 + $0x2d0] sm:$0xff]  ;;  %v169_v21 = vld [vmem:[#allocation3 + $0x348] sm:$0xff]  ;;  %v136_v22 = vld [vmem:[#allocation3 + $0x240] sm:$0xff] }
  0x25   :  { %216 = vmatpush.msra.mxu1 %v82_v51  ;;  %194 = vmatpush.msra.mxu0 %v65_v53  ;;  %v153_v23 = vld [vmem:[#allocation3 + $0x2c8] sm:$0xff]  ;;  %v168_v25 = vld [vmem:[#allocation3 + $0x340] sm:$0xff]  ;;  %v53_v26 = vld [vmem:[%s712_s0 + $0x18] sm:$0xff] }
  0x26   :  { %240 = vmatpush.msra.mxu2 %v97_v54  ;;  %260 = vmatpush.msra.mxu3 %v116_v62  ;;  %v51_v24 = vld [vmem:[%s712_s0 + $0x8] sm:$0xff]  ;;  %v52_v27 = vld [vmem:[%s712_s0 + $0x10] sm:$0xff]  ;;  %v135_v28 = vld [vmem:[#allocation3 + $0x238] sm:$0xff] }
  0x27   :  { %217 = vmatpush.msra.mxu1 %v81_v55  ;;  %195 = vmatpush.msra.mxu0 %v64_v57  ;;  %v152_v29 = vld [vmem:[#allocation3 + $0x2c0] sm:$0xff]  ;;  %v167_v30 = vld [vmem:[#allocation3 + $0x338] sm:$0xff]  ;;  %v134_v31 = vld [vmem:[#allocation3 + $0x230] sm:$0xff] }
  0x28   :  { %241 = vmatpush.msra.mxu2 %v96_v58  ;;  %261 = vmatpush.msra.mxu3 %v115_v2  ;;  %v362_v32 = vld [vmem:[%s715_s3 + $0x78] sm:$0xff]  ;;  %v133_v35 = vld [vmem:[#allocation3 + $0x228] sm:$0xff]  ;;  %v132_v39 = vld [vmem:[#allocation3 + $0x220] sm:$0xff] }
  0x29   :  { %272 = vmatpush.msrb.mxu0 %v143_v59  ;;  %218 = vmatpush.msra.mxu1 %v80_v61  ;;  %v151_v33 = vld [vmem:[#allocation3 + $0x2b8] sm:$0xff]  ;;  %v166_v34 = vld [vmem:[#allocation3 + $0x330] sm:$0xff]  ;;  %v165_v38 = vld [vmem:[#allocation3 + $0x328] sm:$0xff] }
  0x2a   :  { %318 = vmatpush.msrb.mxu2 %v175_v60  ;;  %262 = vmatpush.msra.mxu3 %v114_v6  ;;  %v361_v36 = vld [vmem:[%s715_s3 + $0x70] sm:$0xff]  ;;  %v58_v40 = vld [vmem:[%s712_s0 + $0x40] sm:$0xff]  ;;  %v57_v43 = vld [vmem:[%s712_s0 + $0x38] sm:$0xff] }
  0x2b   :  { %273 = vmatpush.msrb.mxu0 %v142_v63  ;;  %295 = vmatpush.msrb.mxu1 %v159_v0  ;;  %v150_v37 = vld [vmem:[#allocation3 + $0x2b0] sm:$0xff]  ;;  %v149_v41 = vld [vmem:[#allocation3 + $0x2a8] sm:$0xff]  ;;  %v164_v42 = vld [vmem:[#allocation3 + $0x320] sm:$0xff] }
  0x2c   :  { %319 = vmatpush.msrb.mxu2 %v174_v1  ;;  %263 = vmatpush.msra.mxu3 %v113_v10  ;;  %v59_v44 = vld [vmem:[%s712_s0 + $0x48] sm:$0xff]  ;;  %v131_v45 = vld [vmem:[#allocation3 + $0x218] sm:$0xff]  ;;  %v60_v48 = vld [vmem:[%s712_s0 + $0x50] sm:$0xff] }
  0x2d   :  { %274 = vmatpush.msrb.mxu0 %v141_v3  ;;  %296 = vmatpush.msrb.mxu1 %v158_v4  ;;  %v148_v46 = vld [vmem:[#allocation3 + $0x2a0] sm:$0xff]  ;;  %v163_v47 = vld [vmem:[#allocation3 + $0x318] sm:$0xff]  ;;  %v130_v49 = vld [vmem:[#allocation3 + $0x210] sm:$0xff] }
  0x2e   :  { %320 = vmatpush.msrb.mxu2 %v173_v5  ;;  %196 = vmatmul.f32.vlgmr.msra.gmra.mxu0 %v50_v14  ;;  %v147_v50 = vld [vmem:[#allocation3 + $0x298] sm:$0xff]  ;;  %v162_v51 = vld [vmem:[#allocation3 + $0x310] sm:$0xff]  ;;  %v129_v52 = vld [vmem:[#allocation3 + $0x208] sm:$0xff] }
  0x2f   :  { %275 = vmatpush.msrb.mxu0 %v140_v7  ;;  %297 = vmatpush.msrb.mxu1 %v157_v8  ;;  %v146_v53 = vld [vmem:[#allocation3 + $0x290] sm:$0xff]  ;;  %v161_v54 = vld [vmem:[#allocation3 + $0x308] sm:$0xff]  ;;  %v128_v55 = vld [vmem:[#allocation3 + $0x200] sm:$0xff] }
  0x30   :  { %321 = vmatpush.msrb.mxu2 %v172_v9  ;;  %264 = vmatpush.msra.mxu3 %v112_v19  ;;  %v145_v56 = vld [vmem:[#allocation3 + $0x288] sm:$0xff]  ;;  %v160_v57 = vld [vmem:[#allocation3 + $0x300] sm:$0xff]  ;;  %v61_v62 = vld [vmem:[%s712_s0 + $0x58] sm:$0xff] }
  0x31   :  { %276 = vmatpush.msrb.mxu0 %v139_v11  ;;  %298 = vmatpush.msrb.mxu1 %v156_v12  ;;  %v54_v58 = vld [vmem:[%s712_s0 + $0x20] sm:$0xff]  ;;  %v56_v59 = vld [vmem:[%s712_s0 + $0x30] sm:$0xff]  ;;  %v55_v61 = vld [vmem:[%s712_s0 + $0x28] sm:$0xff] }
  0x32   :  { %322 = vmatpush.msrb.mxu2 %v171_v13  ;;  %219 = vmatmul.f32.vlgmr.msra.gmra.mxu1 %v51_v24  ;;  %v144_v60 = vld [vmem:[#allocation3 + $0x280] sm:$0xff]  ;;  %v358_v3 = vld [vmem:[%s715_s3 + $0x58] sm:$0xff]  ;;  %v357_v4 = vld [vmem:[%s715_s3 + $0x50] sm:$0xff] }
  0x33   :  { %277 = vmatpush.msrb.mxu0 %v138_v15  ;;  %299 = vmatpush.msrb.mxu1 %v155_v16  ;;  %v63_v63 = vld [vmem:[%s712_s0 + $0x68] sm:$0xff]  ;;  %v62_v0 = vld [vmem:[%s712_s0 + $0x60] sm:$0xff]  ;;  %v354_v7 = vld [vmem:[%s715_s3 + $0x38] sm:$0xff] }
  0x34   :  { %323 = vmatpush.msrb.mxu2 %v170_v17  ;;  %265 = vmatmul.f32.vlgmr.msra.gmra.mxu3 %v53_v26  ;;  %v360_v1 = vld [vmem:[%s715_s3 + $0x68] sm:$0xff]  ;;  %v359_v2 = vld [vmem:[%s715_s3 + $0x60] sm:$0xff]  ;;  %v353_v8 = vld [vmem:[%s715_s3 + $0x30] sm:$0xff] }
  0x35   :  { %278 = vmatpush.msrb.mxu0 %v137_v18  ;;  %300 = vmatpush.msrb.mxu1 %v154_v20  ;;  %v356_v5 = vld [vmem:[%s715_s3 + $0x48] sm:$0xff]  ;;  %v355_v6 = vld [vmem:[%s715_s3 + $0x40] sm:$0xff]  ;;  %v350_v11 = vld [vmem:[%s715_s3 + $0x18] sm:$0xff] }
  0x36   :  { %324 = vmatpush.msrb.mxu2 %v169_v21  ;;  %367 = vmatpush.msrb.mxu3 %v362_v32  ;;  %v352_v9 = vld [vmem:[%s715_s3 + $0x28] sm:$0xff]  ;;  %v351_v10 = vld [vmem:[%s715_s3 + $0x20] sm:$0xff]  ;;  %v349_v12 = vld [vmem:[%s715_s3 + $0x10] sm:$0xff] }
  0x37   :  { %279 = vmatpush.msrb.mxu0 %v136_v22  ;;  %301 = vmatpush.msrb.mxu1 %v153_v23  ;;  %v348_v13 = vld [vmem:[%s715_s3 + $0x8] sm:$0xff]  ;;  %v347_v14 = vld [vmem:[%s715_s3] sm:$0xff]  ;;  %v403_v19 = vld [vmem:[%s717_s5 + $0x38] sm:$0xff] }
  0x38   :  { %325 = vmatpush.msrb.mxu2 %v168_v25  ;;  %368 = vmatpush.msrb.mxu3 %v361_v36  ;;  %v490_v17 = vld [vmem:[%s714_s2] ss:$0 sm:$0xff]  ;;  %v402_v20 = vld [vmem:[%s717_s5 + $0x30] sm:$0xff]  ;;  %v401_v22 = vld [vmem:[%s717_s5 + $0x28] sm:$0xff] }
  0x39   :  { %242 = vmatmul.f32.vlgmr.msra.gmra.mxu2 %v52_v27  ;;  %280 = vmatpush.msrb.mxu0 %v135_v28  ;;  %v400_v26 = vld [vmem:[%s717_s5 + $0x20] sm:$0xff]  ;;  %v399_v28 = vld [vmem:[%s717_s5 + $0x18] sm:$0xff] }
  0x3a   :  { %302 = vmatpush.msrb.mxu1 %v152_v29  ;;  %326 = vmatpush.msrb.mxu2 %v167_v30 }
  0x3b   :  { %281 = vmatpush.msrb.mxu0 %v134_v31  ;;  %222 = vmatmul.f32.gmra.mxu1 %v58_v40 }
  0x3c   :  { %303 = vmatpush.msrb.mxu1 %v151_v33  ;;  %327 = vmatpush.msrb.mxu2 %v166_v34 }
  0x3d   :  { %282 = vmatpush.msrb.mxu0 %v133_v35  ;;  %268 = vmatmul.f32.gmra.mxu3 %v60_v48 }
  0x3e   :  { %304 = vmatpush.msrb.mxu1 %v150_v37  ;;  %328 = vmatpush.msrb.mxu2 %v165_v38 }
  0x3f   :  { %283 = vmatpush.msrb.mxu0 %v132_v39  ;;  %369 = vmatpush.msrb.mxu3 %v360_v1  ;;  %v492_v1 = vld [vmem:[%s718_s6] ss:$0 sm:$0xff] }
  0x40   :  { %305 = vmatpush.msrb.mxu1 %v149_v41  ;;  %329 = vmatpush.msrb.mxu2 %v164_v42 }
  0x41   :  { %199 = vmatmul.f32.gmra.mxu0 %v57_v43  ;;  %245 = vmatmul.f32.gmra.mxu2 %v59_v44 }
  0x42   :  { %284 = vmatpush.msrb.mxu0 %v131_v45  ;;  %306 = vmatpush.msrb.mxu1 %v148_v46 }
  0x43   :  { %330 = vmatpush.msrb.mxu2 %v163_v47  ;;  %370 = vmatpush.msrb.mxu3 %v359_v2 }
  0x44   :  { %285 = vmatpush.msrb.mxu0 %v130_v49  ;;  %307 = vmatpush.msrb.mxu1 %v147_v50 }
  0x45   :  { %331 = vmatpush.msrb.mxu2 %v162_v51  ;;  %371 = vmatpush.msrb.mxu3 %v358_v3 }
  0x46   :  { %286 = vmatpush.msrb.mxu0 %v129_v52  ;;  %308 = vmatpush.msrb.mxu1 %v146_v53  ;;  %v398_v53 = vld [vmem:[%s717_s5 + $0x10] sm:$0xff] }
  0x47   :  { %332 = vmatpush.msrb.mxu2 %v161_v54  ;;  %372 = vmatpush.msrb.mxu3 %v357_v4  ;;  %v397_v54 = vld [vmem:[%s717_s5 + $0x8] sm:$0xff]  ;;  %v493_v4 = vld [vmem:[%s719_s7] ss:$0 sm:$0xff] }
  0x48   :  { %287 = vmatpush.msrb.mxu0 %v128_v55  ;;  %309 = vmatpush.msrb.mxu1 %v145_v56  ;;  %v396_v55 = vld [vmem:[%s717_s5] sm:$0xff] }
  0x49   :  { %333 = vmatpush.msrb.mxu2 %v160_v57  ;;  %288 = vmatmul.f32.vlgmr.msrb.gmra.mxu0 %v54_v58  ;;  %v491_v56 = vld [vmem:[%s716_s4] ss:$0 sm:$0xff] }
  0x4a   :  { %334 = vmatmul.f32.vlgmr.msrb.gmra.mxu2 %v56_v59  ;;  %310 = vmatpush.msrb.mxu1 %v144_v60 }
  0x4b   :  { %311 = vmatmul.f32.vlgmr.msrb.gmra.mxu1 %v55_v61  ;;  %373 = vmatpush.msrb.mxu3 %v356_v5 }
  0x4c   :  { %423 = vmatpush.msra.mxu0 %v403_v19  ;;  %479 = vmatpush.msra.mxu1 %v403_v19 }
  0x4d   :  { %374 = vmatpush.msrb.mxu3 %v355_v6 }
  0x4e   :  { %424 = vmatpush.msra.mxu0 %v402_v20  ;;  %480 = vmatpush.msra.mxu1 %v402_v20 }
  0x4f   :  { %375 = vmatpush.msrb.mxu3 %v354_v7 }
  0x50   :  { %425 = vmatpush.msra.mxu0 %v401_v22  ;;  %481 = vmatpush.msra.mxu1 %v401_v22 }
  0x51   :  { %291 = vmatmul.f32.gmra.mxu0 %v61_v62  ;;  %376 = vmatpush.msrb.mxu3 %v353_v8 }
  0x52   :  { %337 = vmatmul.f32.gmra.mxu2 %v63_v63  ;;  %426 = vmatpush.msra.mxu0 %v400_v26 }
  0x53   :  { %314 = vmatmul.f32.gmra.mxu1 %v62_v0  ;;  %377 = vmatpush.msrb.mxu3 %v352_v9 }
  0x54   :  { %482 = vmatpush.msra.mxu1 %v400_v26  ;;  %427 = vmatpush.msra.mxu0 %v399_v28 }
  0x55   :  { %378 = vmatpush.msrb.mxu3 %v351_v10 }
  0x56   :  { %483 = vmatpush.msra.mxu1 %v399_v28  ;;  %428 = vmatpush.msra.mxu0 %v398_v53 }
  0x57   :  { %379 = vmatpush.msrb.mxu3 %v350_v11 }
  0x58   :  { %484 = vmatpush.msra.mxu1 %v398_v53  ;;  %429 = vmatpush.msra.mxu0 %v397_v54 }
  0x59   :  { %380 = vmatpush.msrb.mxu3 %v349_v12 }
  0x5a   :  { %485 = vmatpush.msra.mxu1 %v397_v54  ;;  %430 = vmatpush.msra.mxu0 %v396_v55 }
  0x5b   :  { %381 = vmatpush.msrb.mxu3 %v348_v13 }
  0x5c   :  { %486 = vmatpush.msra.mxu1 %v396_v55 }
  0x5d   :  { %382 = vmatpush.msrb.mxu3 %v347_v14 }
  0xab   :  { %v197_v15 = vpop.f32.mrf.mxu0 }
  0xac   :  { %v198_v18 = vadd.f32 %v490_v17, %v197_v15  ;;  %v494_v15 = vld [vmem:[#allocation2] ss:$0 sm:$0xff] }
  0xaf   :  { %v220_v16 = vpop.f32.mrf.mxu1 }
  0xb0   :  { %v221_v23 = vadd.f32 %v220_v16, %v198_v18 }
  0xb7   :  { %v266_v27 = vpop.f32.mrf.mxu3 }
  0xb8   :  { %v223_v25 = vpop.f32.mrf.mxu1 }
  0xbc   :  { %v243_v21 = vpop.f32.mrf.mxu2 }
  0xbd   :  { %v244_v29 = vadd.f32 %v243_v21, %v221_v23 }
  0xbe   :  { %v200_v24 = vpop.f32.mrf.mxu0 }
  0xbf   :  { %v201_v30 = vadd.f32 %v490_v17, %v200_v24  ;;  %v267_v32 = vadd.f32 %v266_v27, %v244_v29 }
  0xc0   :  { %v269_v38 = vpop.f32.mrf.mxu3 }
  0xc1   :  { %v224_v33 = vadd.f32 %v223_v25, %v201_v30 }
  0xc4   :  { %v246_v31 = vpop.f32.mrf.mxu2 }
  0xc5   :  { %v247_v37 = vadd.f32 %v246_v31, %v224_v33 }
  0xc6   :  { %v289_v34 = vpop.f32.mrf.mxu0 }
  0xc7   :  { %v290_v35 = vadd.f32 %v289_v34, %v267_v32  ;;  %v270_v41 = vadd.f32 %v269_v38, %v247_v37 }
  0xc8   :  { %v312_v36 = vpop.f32.mrf.mxu1 }
  0xc9   :  { %v313_v39 = vadd.f32 %v312_v36, %v290_v35 }
  0xcd   :  { %v335_v40 = vpop.f32.mrf.mxu2 }
  0xce   :  { %v336_v42 = vadd.f32 %v335_v40, %v313_v39  ;;  %v292_v43 = vpop.f32.mrf.mxu0 }
  0xcf   :  { %v293_v45 = vadd.f32 %v292_v43, %v270_v41 }
  0xd0   :  { %v343_v44 = vmul.f32 0.2, %v336_v42  ;;  %vm341_vm0 = vcmp.gt.f32.partialorder %v336_v42, 0.0  ;;  %v315_v46 = vpop.f32.mrf.mxu1 }
  0xd1   :  { %v316_v48 = vadd.f32 %v315_v46, %v293_v45 }
  0xd2   :  { %v345_v47 = vsel %vm341_vm0, %v336_v42, %v343_v44 }
  0xd3   :  { %383 = vmatmul.f32.vlgmr.msrb.gmra.mxu3 %v345_v47 }
  0xd5   :  { %v338_v49 = vpop.f32.mrf.mxu2 }
  0xd6   :  { %v339_v50 = vadd.f32 %v338_v49, %v316_v48 }
  0xd8   :  { %vm342_vm1 = vcmp.gt.f32.partialorder %v339_v50, 0.0  ;;  %v344_v51 = vmul.f32 0.2, %v339_v50 }
  0xda   :  { %v346_v52 = vsel %vm342_vm1, %v339_v50, %v344_v51 }
  0xdb   :  { %386 = vmatmul.f32.gmra.mxu3 %v346_v52 }
 0x156   :  { %v384_v57 = vpop.f32.mrf.mxu3 }
 0x157   :  { %v385_v58 = vadd.f32 %v491_v56, %v384_v57 }
 0x159   :  { %vm390_vm2 = vcmp.gt.f32.partialorder %v385_v58, 0.0  ;;  %v392_v59 = vmul.f32 0.2, %v385_v58 }
 0x15b   :  { %v394_v60 = vsel %vm390_vm2, %v385_v58, %v392_v59 }
 0x15c   :  { %477 = vmatmul.msk.f32.vlgmr.msra.gmra.mxu0 %vm408_vm3, %v394_v60 }
 0x15e   :  { %v387_v61 = vpop.f32.mrf.mxu3 }
 0x15f   :  { %v388_v62 = vadd.f32 %v491_v56, %v387_v61 }
 0x161   :  { %vm391_vm4 = vcmp.gt.f32.partialorder %v388_v62, 0.0  ;;  %v393_v63 = vmul.f32 0.2, %v388_v62 }
 0x163   :  { %v395_v0 = vsel %vm391_vm4, %v388_v62, %v393_v63 }
 0x164   :  { %478 = vmatmul.msk.f32.vlgmr.msra.gmra.mxu1 %vm408_vm3, %v395_v0 }
 0x1d9   :  { %v432_v2 = vpop.f32.mrf.mxu0 }
 0x1da   :  { %v433_v3 = vadd.f32 %v492_v1, %v432_v2 }
 0x1dc   :  { %v440_v5 = vmul.f32 0.2, %v433_v3  ;;  %vm438_vm5 = vcmp.gt.f32.partialorder %v433_v3, 0.0 }
 0x1de   :  { %v442_v6 = vsel %vm438_vm5, %v433_v3, %v440_v5 }
 0x1df   :  { %v448_v7 = vmul.f32 %v493_v4, %v442_v6 }
 0x1e1   :  { %v435_v8 = vpop.f32.mrf.mxu1  ;;  %v451_v9 = vsel %vm450_vm6, %v448_v7, 0.0 }
 0x1e2   :  { %v436_v10 = vadd.f32 %v492_v1, %v435_v8  ;;  %452 = vadd.xlane.f32.xlu0 %v451_v9 }
 0x1e4   :  { %vm439_vm7 = vcmp.gt.f32.partialorder %v436_v10, 0.0  ;;  %v441_v11 = vmul.f32 0.2, %v436_v10 }
 0x1e6   :  { %v443_v12 = vsel %vm439_vm7, %v436_v10, %v441_v11 }
 0x1e7   :  { %v449_v13 = vmul.f32 %v493_v4, %v443_v12 }
 0x1e9   :  { %v454_v14 = vsel %vm450_vm6, %v449_v13, 0.0 }
 0x1ea   :  { %455 = vadd.xlane.f32.xlu0 %v454_v14 }
 0x255   :  { %v453_v16 = vpop.xlane.xlu0 %452 }
 0x256   :  { %v461_v17 = vadd.f32 %v494_v15, %v453_v16 }
 0x258   :  { %vm463_vm9 = vcmp.gt.f32.partialorder %v461_v17, 0.0  ;;  %v465_v18 = vmul.f32 0.2, %v461_v17 }
 0x25a   :  { %v467_v19 = vsel %vm463_vm9, %v461_v17, %v465_v18 }
 0x25b   :  { %470 = vst.msk [vmem:[%s721_s9] sm:$0xff] %vm469_vm8, %v467_v19 }
 0x25d   :  { %v456_v20 = vpop.xlane.xlu0 %455 }
 0x25e   :  { %v462_v21 = vadd.f32 %v494_v15, %v456_v20 }
 0x260   :  { %vm464_vm10 = vcmp.gt.f32.partialorder %v462_v21, 0.0  ;;  %v466_v22 = vmul.f32 0.2, %v462_v21 }
 0x262   :  { %v468_v23 = vsel %vm464_vm10, %v462_v21, %v466_v22 }
 0x263   :  { %471 = vst.msk [vmem:[%s721_s9 + $0x8] sm:$0xff] %vm469_vm8, %v468_v23 }
 0x264   :  { %476 = vsyncpa [#allocation4], 1 }

</bundles_post_ra>
